<compile_context>
chip_gen: v7x
topology: tpu7x:2x2x1
jax: 0.10.0
libtpu: 0.0.40
codegen_flags: <defaults>
</compile_context>

<pallas_src>
import math

import jax
import jax.numpy as jnp
from jax.experimental import pallas as pl
from jax.experimental.pallas import tpu as pltpu

BN_EPS = 1e-5        # nn.BatchNorm1d default eps
NORM_EPS = 1e-12     # F.normalize default eps
LANE = 128           # TPU lane width


def _round_up(n, m):
    return ((n + m - 1) // m) * m


# ---------------------------------------------------------------------------
# Fused kernel: K-tiled backbone (3 views) + shared MLP x2 + proto MLP + classifier
# ---------------------------------------------------------------------------
def bcl_fused_kernel(xs_ref, bb_w_ref, bb_b_ref,
                     g1_ref, be1_ref, pg1_ref, pbe1_ref,
                     w1cat_ref, b1cat_ref, w2cat_ref, b2cat_ref,
                     cls_wt_ref,
                     out12_ref, proto_ref, logits_ref,
                     acc_ref):
    k = pl.program_id(0)

    @pl.when(k == 0)
    def _():
        acc_ref[...] = jnp.zeros_like(acc_ref)

    # Backbone partial product for this K-tile: (3B, tk)bf16 @ (tk, D)bf16,
    # f32 accumulation in VMEM scratch.  Views are stacked along rows.
    acc_ref[...] += jnp.dot(xs_ref[...], bb_w_ref[...],
                            preferred_element_type=jnp.float32)

    @pl.when(k == pl.num_programs(0) - 1)
    def _():
        B = xs_ref.shape[0] // 3          # rows per view
        D = bb_w_ref.shape[1]             # mlp_dim_in
        Dp = w2cat_ref.shape[1] // 2      # lane-padded mlp_dim_out

        # Backbone epilogue: bias + ReLU.
        feats = jnp.maximum(acc_ref[...] + bb_b_ref[...], 0.0)      # (3B, D) f32

        # ---- Stage 1: ONE wide MXU call covering
        #   rows [0,2B)   x12     -> cols [0,D)      : mlp.fc1
        #   rows [2B,3B)  x3      -> cols [2D,2D+NCp): classifier logits
        #   rows [3B,..)  cls_w.T -> cols [D,2D)     : mlp_for_prototype.fc1
        lhs1 = jnp.concatenate([feats.astype(jnp.bfloat16), cls_wt_ref[...]],
                               axis=0)
        z1 = jnp.dot(lhs1, w1cat_ref[...],
                     preferred_element_type=jnp.float32) + b1cat_ref[...]
        h12 = z1[:2 * B, :D]
        logits_ref[...] = z1[2 * B:3 * B, 2 * D:]        # full-width vst
        hp = z1[3 * B:, D:2 * D]

        def bn_relu(h, gamma, beta):
            # BatchNorm1d, training mode: batch stats over this call's rows,
            # biased variance, affine, then ReLU.
            mean = jnp.mean(h, axis=0, keepdims=True)
            var = jnp.mean((h - mean) ** 2, axis=0, keepdims=True)
            return jnp.maximum((h - mean) * jax.lax.rsqrt(var + BN_EPS)
                               * gamma + beta, 0.0)

        g1, be1 = g1_ref[...], be1_ref[...]
        bn0 = bn_relu(h12[:B], g1, be1)                  # per-view BN stats
        bn1 = bn_relu(h12[B:], g1, be1)                  # (matches two mlp() calls)
        bnp = bn_relu(hp, pg1_ref[...], pbe1_ref[...])   # stats over NC rows

        # ---- Stage 2: ONE wide MXU call for both output projections.
        #   rows [0,2B)  -> cols [0,Dp)   : mlp.fc2
        #   rows [2B,..) -> cols [Dp,2Dp) : mlp_for_prototype.fc2
        lhs2 = jnp.concatenate([bn0, bn1, bnp], axis=0).astype(jnp.bfloat16)
        z2 = jnp.dot(lhs2, w2cat_ref[...],
                     preferred_element_type=jnp.float32) + b2cat_ref[...]

        def normalize(z):
            # x / max(||x||, eps) == x * rsqrt(max(||x||^2, eps^2)); rsqrt -> EUP.
            sq = jnp.sum(z * z, axis=1, keepdims=True)
            return z * jax.lax.rsqrt(jnp.maximum(sq, NORM_EPS * NORM_EPS))

        out12_ref[...] = normalize(z2[:2 * B, :Dp])      # one (2B, Dp) store
        proto_ref[...] = normalize(z2[2 * B:, Dp:])


# ---------------------------------------------------------------------------
# Parameter init (deterministic, PyTorch-like uniform bounds), packed for the
# kernel: matmul operands bf16 at rest, weights pre-concatenated & lane-padded.
# ---------------------------------------------------------------------------
def _linear_init(kw, kb, fan_in, fan_out):
    bound = 1.0 / math.sqrt(fan_in)
    w = jax.random.uniform(kw, (fan_in, fan_out), jnp.float32, -bound, bound)
    b = jax.random.uniform(kb, (1, fan_out), jnp.float32, -bound, bound)
    return w, b


def init_params(key, in_feat, mlp_dim_in, mlp_dim_out, num_classes):
    D = mlp_dim_in
    Dp = _round_up(mlp_dim_out, LANE)
    NCp = _round_up(num_classes, LANE)

    (kb, kbb, k1a, k1b, k1c, k1d, k2a, k2b, k2c, k2d, kc) = jax.random.split(key, 11)

    # Synthetic backbone: flatten -> Linear -> ReLU.
    bb_w, bb_b = _linear_init(kb, kbb, in_feat, D)

    # mlp and mlp_for_prototype (shared-structure projection heads).
    w1, b1 = _linear_init(k1a, k1b, D, D)
    w2, b2 = _linear_init(k1c, k1d, D, mlp_dim_out)
    pw1, pb1 = _linear_init(k2a, k2b, D, D)
    pw2, pb2 = _linear_init(k2c, k2d, D, mlp_dim_out)

    # LinearClassifier.weight: (D, num_classes), kaiming_uniform_(a=sqrt(5));
    # torch's fan_in for this shape is num_classes -> bound 1/sqrt(num_classes).
    cls_bound = 1.0 / math.sqrt(num_classes)
    cls_w = jax.random.uniform(kc, (D, num_classes), jnp.float32,
                               -cls_bound, cls_bound)

    pad_out = lambda a: jnp.pad(a, ((0, 0), (0, Dp - mlp_dim_out)))
    cls_wp = jnp.pad(cls_w, ((0, 0), (0, NCp - num_classes)))  # zero "classes"

    return {
        "bb_w": bb_w.astype(jnp.bfloat16),               # (Fin, D) bf16 at rest
        "bb_b": bb_b,                                     # (1, D) f32
        "gamma": jnp.ones((1, D), jnp.float32),           # BatchNorm1d defaults
        "beta": jnp.zeros((1, D), jnp.float32),
        "p_gamma": jnp.ones((1, D), jnp.float32),
        "p_beta": jnp.zeros((1, D), jnp.float32),
        # Stage-1 RHS: [mlp.fc1 | proto.fc1 | classifier(padded)], pre-concat.
        "w1cat": jnp.concatenate([w1, pw1, cls_wp], axis=1).astype(jnp.bfloat16),
        "b1cat": jnp.concatenate(
            [b1, pb1, jnp.zeros((1, NCp), jnp.float32)], axis=1),
        # Stage-2 RHS: [mlp.fc2 | proto.fc2], lane-padded to Dp each.
        "w2cat": jnp.concatenate([pad_out(w2), pad_out(pw2)],
                                 axis=1).astype(jnp.bfloat16),
        "b2cat": jnp.concatenate([pad_out(b2), pad_out(pb2)], axis=1),
        # classifier.weight.T (unpadded), pre-transposed, bf16 at rest.
        "cls_wt": cls_w.T.astype(jnp.bfloat16),           # (NC, D)
    }


# ---------------------------------------------------------------------------
# Full BCLMultiBranchModel forward (one pallas_call)
# ---------------------------------------------------------------------------
def bcl_forward(params, x, mlp_dim_out, num_classes):
    B = x.shape[0]
    # f32/bf16 sublane alignment (also required by training-mode BatchNorm1d
    # per-view statistics: zero-padding rows would change the stats).
    assert B % 8 == 0, "batch size must be a multiple of 8"
    assert num_classes % 8 == 0, "num_classes must be a multiple of 8"

    # Stack the three views along rows and cast to bf16 (one fused XLA op).
    xs = jnp.swapaxes(x, 0, 1).reshape(3 * B, -1).astype(jnp.bfloat16)

    Fin = xs.shape[1]
    D = params["bb_w"].shape[1]            # mlp_dim_in
    NC = params["cls_wt"].shape[0]         # num_classes
    Dp = params["w2cat"].shape[1] // 2     # lane-padded mlp_dim_out
    NCp = params["b1cat"].shape[1] - 2 * D  # lane-padded num_classes

    # K-tile over the flattened input-feature axis (pipelined xs / bb_w DMAs).
    tk = Fin
    for cand in (512, 256, 128):
        if Fin % cand == 0:
            tk = cand
            break
    nk = Fin // tk

    def const2(shape):
        return pl.BlockSpec(shape, lambda k: (0, 0))

    in_specs = [
        pl.BlockSpec((3 * B, tk), lambda k: (0, k)),   # xs: K-tiled
        pl.BlockSpec((tk, D), lambda k: (k, 0)),       # bb_w: K-tiled
        const2((1, D)),                                # bb_b
        const2((1, D)), const2((1, D)),                # gamma, beta
        const2((1, D)), const2((1, D)),                # p_gamma, p_beta
        const2((D, 2 * D + NCp)),                      # w1cat
        const2((1, 2 * D + NCp)),                      # b1cat
        const2((D, 2 * Dp)),                           # w2cat
        const2((1, 2 * Dp)),                           # b2cat
        const2((NC, D)),                               # cls_wt
    ]
    out_specs = [
        const2((2 * B, Dp)),                           # [out1; out2]
        const2((NC, Dp)),                              # prototypes
        const2((B, NCp)),                              # logits (padded)
    ]
    out_shapes = (
        jax.ShapeDtypeStruct((2 * B, Dp), jnp.float32),
        jax.ShapeDtypeStruct((NC, Dp), jnp.float32),
        jax.ShapeDtypeStruct((B, NCp), jnp.float32),
    )

    flops = (2 * (3 * B) * Fin * D                       # backbone
             + 2 * (3 * B + NC) * D * (2 * D + NCp)      # fused stage 1
             + 2 * (2 * B + NC) * D * (2 * Dp))          # fused stage 2
    bytes_in = (xs.size * 2
                + params["bb_w"].size * 2 + params["w1cat"].size * 2
                + params["w2cat"].size * 2 + params["cls_wt"].size * 2
                + (params["bb_b"].size + params["b1cat"].size
                   + params["b2cat"].size + 4 * D) * 4)
    bytes_out = (2 * B * Dp + NC * Dp + B * NCp) * 4
    cost = pl.CostEstimate(flops=int(flops),
                           transcendentals=int(3 * D + 2 * B + NC),
                           bytes_accessed=int(bytes_in + bytes_out))

    out12, proto_p, logits_p = pl.pallas_call(
        bcl_fused_kernel,
        out_shape=out_shapes,
        grid_spec=pltpu.PrefetchScalarGridSpec(
            num_scalar_prefetch=0,
            grid=(nk,),
            in_specs=in_specs,
            out_specs=out_specs,
            scratch_shapes=[pltpu.VMEM((3 * B, D), jnp.float32)]),
        compiler_params=pltpu.CompilerParams(
            dimension_semantics=("arbitrary",),
            vmem_limit_bytes=32 * 1024 * 1024),
        cost_estimate=cost,
    )(xs, params["bb_w"], params["bb_b"],
      params["gamma"], params["beta"], params["p_gamma"], params["p_beta"],
      params["w1cat"], params["b1cat"], params["w2cat"], params["b2cat"],
      params["cls_wt"])

    out1 = out12[:B, :mlp_dim_out]
    out2 = out12[B:, :mlp_dim_out]
    proto = proto_p[:, :mlp_dim_out]
    logits = logits_p[:, :num_classes]
    return out1, out2, proto, logits


if __name__ == "__main__":
    B, C, H, W = 8, 4, 16, 16
    mlp_dim_in, mlp_dim_out, num_classes = 128, 64, 16
    in_feat = C * H * W

    key = jax.random.PRNGKey(0)
    kx, kp = jax.random.split(key)
    x = jax.random.normal(kx, (B, 3, C, H, W), dtype=jnp.float32)
    params = init_params(kp, in_feat, mlp_dim_in, mlp_dim_out, num_classes)

    fwd = jax.jit(bcl_forward, static_argnames=("mlp_dim_out", "num_classes"))
    outs = fwd(params, x, mlp_dim_out=mlp_dim_out, num_classes=num_classes)
    jax.block_until_ready(outs)

    o1, o2, proto, logits = outs
    assert o1.shape == (B, mlp_dim_out)
    assert o2.shape == (B, mlp_dim_out)
    assert proto.shape == (num_classes, mlp_dim_out)
    assert logits.shape == (B, num_classes)
    assert all(bool(jnp.all(jnp.isfinite(o))) for o in outs)
    print("KERNEL_OK")
</pallas_src>

<mosaic_0001>
module attributes {stable_mosaic.version = 11 : i64} {
  func.func @bcl_fused_kernel(%arg0: i32, %arg1: memref<24x512xbf16, #tpu.memory_space<vmem>>, %arg2: memref<512x128xbf16, #tpu.memory_space<vmem>>, %arg3: memref<1x128xf32, #tpu.memory_space<vmem>>, %arg4: memref<1x128xf32, #tpu.memory_space<vmem>>, %arg5: memref<1x128xf32, #tpu.memory_space<vmem>>, %arg6: memref<1x128xf32, #tpu.memory_space<vmem>>, %arg7: memref<1x128xf32, #tpu.memory_space<vmem>>, %arg8: memref<128x384xbf16, #tpu.memory_space<vmem>>, %arg9: memref<1x384xf32, #tpu.memory_space<vmem>>, %arg10: memref<128x256xbf16, #tpu.memory_space<vmem>>, %arg11: memref<1x256xf32, #tpu.memory_space<vmem>>, %arg12: memref<16x128xbf16, #tpu.memory_space<vmem>>, %arg13: memref<16x128xf32, #tpu.memory_space<vmem>>, %arg14: memref<16x128xf32, #tpu.memory_space<vmem>>, %arg15: memref<8x128xf32, #tpu.memory_space<vmem>>, %arg16: memref<24x128xf32, #tpu.memory_space<vmem>>) attributes {dimension_semantics = [#tpu.dimension_semantics<arbitrary>], iteration_bounds = array<i64: 2>, scalar_prefetch = 0 : i64, scratch_operands = 1 : i64, tpu.core_type = #tpu.core_type<tc>, window_params = [{transform_indices = @transform_0, window_bounds = array<i64: 24, 512>}, {transform_indices = @transform_1, window_bounds = array<i64: 512, 128>}, {pipeline_mode = #tpu.pipeline_mode<synchronous>, transform_indices = @transform_2, window_bounds = array<i64: 1, 128>}, {pipeline_mode = #tpu.pipeline_mode<synchronous>, transform_indices = @transform_3, window_bounds = array<i64: 1, 128>}, {pipeline_mode = #tpu.pipeline_mode<synchronous>, transform_indices = @transform_4, window_bounds = array<i64: 1, 128>}, {pipeline_mode = #tpu.pipeline_mode<synchronous>, transform_indices = @transform_5, window_bounds = array<i64: 1, 128>}, {pipeline_mode = #tpu.pipeline_mode<synchronous>, transform_indices = @transform_6, window_bounds = array<i64: 1, 128>}, {pipeline_mode = #tpu.pipeline_mode<synchronous>, transform_indices = @transform_7, window_bounds = array<i64: 128, 384>}, {pipeline_mode = #tpu.pipeline_mode<synchronous>, transform_indices = @transform_8, window_bounds = array<i64: 1, 384>}, {pipeline_mode = #tpu.pipeline_mode<synchronous>, transform_indices = @transform_9, window_bounds = array<i64: 128, 256>}, {pipeline_mode = #tpu.pipeline_mode<synchronous>, transform_indices = @transform_10, window_bounds = array<i64: 1, 256>}, {pipeline_mode = #tpu.pipeline_mode<synchronous>, transform_indices = @transform_11, window_bounds = array<i64: 16, 128>}, {pipeline_mode = #tpu.pipeline_mode<synchronous>, transform_indices = @transform_12, window_bounds = array<i64: 16, 128>}, {pipeline_mode = #tpu.pipeline_mode<synchronous>, transform_indices = @transform_13, window_bounds = array<i64: 16, 128>}, {pipeline_mode = #tpu.pipeline_mode<synchronous>, transform_indices = @transform_14, window_bounds = array<i64: 8, 128>}]} {
    %c0_i32 = arith.constant 0 : i32
    %0 = arith.cmpi eq, %arg0, %c0_i32 : i32
    %1 = arith.extui %0 : i1 to i32
    %c0_i32_0 = arith.constant 0 : i32
    %2 = arith.cmpi ne, %1, %c0_i32_0 : i32
    scf.if %2 {
      %cst_9 = arith.constant 0.000000e+00 : f32
      %12 = vector.broadcast %cst_9 : f32 to vector<24x128xf32>
      %c0_10 = arith.constant 0 : index
      %c0_11 = arith.constant 0 : index
      %13 = vector.load %arg16[%c0_10, %c0_11] : memref<24x128xf32, #tpu.memory_space<vmem>>, vector<24x128xf32>
      tpu.vector_store %arg16[%c0_10, %c0_11], %12 {strides = array<i32>} : memref<24x128xf32, #tpu.memory_space<vmem>>, vector<24x128xf32>,
    } else {
    }
    %c0 = arith.constant 0 : index
    %c0_1 = arith.constant 0 : index
    %3 = vector.load %arg16[%c0, %c0_1] : memref<24x128xf32, #tpu.memory_space<vmem>>, vector<24x128xf32>
    %c0_2 = arith.constant 0 : index
    %c0_3 = arith.constant 0 : index
    %4 = vector.load %arg1[%c0_2, %c0_3] : memref<24x512xbf16, #tpu.memory_space<vmem>>, vector<24x512xbf16>
    %c0_4 = arith.constant 0 : index
    %c0_5 = arith.constant 0 : index
    %5 = vector.load %arg2[%c0_4, %c0_5] : memref<512x128xbf16, #tpu.memory_space<vmem>>, vector<512x128xbf16>
    %cst = arith.constant dense<0.000000e+00> : vector<24x128xf32>
    %6 = tpu.matmul %4, %5, %cst {dimension_numbers = #tpu.dot_dimension_numbers<[1], [0], [0], [1], [0, 0, 1, 1], [], []>} : vector<24x512xbf16>, vector<512x128xbf16>, vector<24x128xf32> -> vector<24x128xf32>
    %7 = arith.addf %3, %6 : vector<24x128xf32>
    %c0_6 = arith.constant 0 : index
    %c0_7 = arith.constant 0 : index
    %8 = vector.load %arg16[%c0_6, %c0_7] : memref<24x128xf32, #tpu.memory_space<vmem>>, vector<24x128xf32>
    tpu.vector_store %arg16[%c0_6, %c0_7], %7 {strides = array<i32>} : memref<24x128xf32, #tpu.memory_space<vmem>>, vector<24x128xf32>,
    %c1_i32 = arith.constant 1 : i32
    %9 = arith.cmpi eq, %arg0, %c1_i32 : i32
    %10 = arith.extui %9 : i1 to i32
    %c0_i32_8 = arith.constant 0 : i32
    %11 = arith.cmpi ne, %10, %c0_i32_8 : i32
    scf.if %11 {
      %c0_9 = arith.constant 0 : index
      %c0_10 = arith.constant 0 : index
      %12 = vector.load %arg16[%c0_9, %c0_10] : memref<24x128xf32, #tpu.memory_space<vmem>>, vector<24x128xf32>
      %c0_11 = arith.constant 0 : index
      %c0_12 = arith.constant 0 : index
      %13 = vector.load %arg3[%c0_11, %c0_12] : memref<1x128xf32, #tpu.memory_space<vmem>>, vector<1x128xf32>
      %14 = vector.broadcast %13 : vector<1x128xf32> to vector<24x128xf32>
      %15 = arith.addf %12, %14 : vector<24x128xf32>
      %cst_13 = arith.constant 0.000000e+00 : f32
      %16 = vector.broadcast %cst_13 : f32 to vector<24x128xf32>
      %17 = arith.maximumf %15, %16 : vector<24x128xf32>
      %18 = arith.truncf %17 : vector<24x128xf32> to vector<24x128xbf16>
      %c0_14 = arith.constant 0 : index
      %c0_15 = arith.constant 0 : index
      %19 = vector.load %arg12[%c0_14, %c0_15] : memref<16x128xbf16, #tpu.memory_space<vmem>>, vector<16x128xbf16>
      %20 = tpu.concatenate %18, %19 in 0 : vector<24x128xbf16>, vector<16x128xbf16> -> vector<40x128xbf16>
      %c0_16 = arith.constant 0 : index
      %c0_17 = arith.constant 0 : index
      %21 = vector.load %arg8[%c0_16, %c0_17] : memref<128x384xbf16, #tpu.memory_space<vmem>>, vector<128x384xbf16>
      %cst_18 = arith.constant dense<0.000000e+00> : vector<40x384xf32>
      %22 = tpu.matmul %20, %21, %cst_18 {dimension_numbers = #tpu.dot_dimension_numbers<[1], [0], [0], [1], [0, 0, 1, 1], [], []>} : vector<40x128xbf16>, vector<128x384xbf16>, vector<40x384xf32> -> vector<40x384xf32>
      %c0_19 = arith.constant 0 : index
      %c0_20 = arith.constant 0 : index
      %23 = vector.load %arg9[%c0_19, %c0_20] : memref<1x384xf32, #tpu.memory_space<vmem>>, vector<1x384xf32>
      %24 = vector.broadcast %23 : vector<1x384xf32> to vector<40x384xf32>
      %25 = arith.addf %22, %24 : vector<40x384xf32>
      %26 = vector.extract_strided_slice %25 {offsets = [0, 0], sizes = [16, 128], strides = [1, 1]} : vector<40x384xf32> to vector<16x128xf32>
      %27 = vector.extract_strided_slice %25 {offsets = [16, 256], sizes = [8, 128], strides = [1, 1]} : vector<40x384xf32> to vector<8x128xf32>
      %c0_21 = arith.constant 0 : index
      %c0_22 = arith.constant 0 : index
      %28 = vector.load %arg15[%c0_21, %c0_22] : memref<8x128xf32, #tpu.memory_space<vmem>>, vector<8x128xf32>
      tpu.vector_store %arg15[%c0_21, %c0_22], %27 {strides = array<i32>} : memref<8x128xf32, #tpu.memory_space<vmem>>, vector<8x128xf32>,
      %29 = vector.extract_strided_slice %25 {offsets = [24, 128], sizes = [16, 128], strides = [1, 1]} : vector<40x384xf32> to vector<16x128xf32>
      %c0_23 = arith.constant 0 : index
      %c0_24 = arith.constant 0 : index
      %30 = vector.load %arg4[%c0_23, %c0_24] : memref<1x128xf32, #tpu.memory_space<vmem>>, vector<1x128xf32>
      %c0_25 = arith.constant 0 : index
      %c0_26 = arith.constant 0 : index
      %31 = vector.load %arg5[%c0_25, %c0_26] : memref<1x128xf32, #tpu.memory_space<vmem>>, vector<1x128xf32>
      %32 = vector.extract_strided_slice %26 {offsets = [0, 0], sizes = [8, 128], strides = [1, 1]} : vector<16x128xf32> to vector<8x128xf32>
      %cst_27 = arith.constant dense<0.000000e+00> : vector<128xf32>
      %33 = vector.multi_reduction <add>, %32, %cst_27 [0] : vector<8x128xf32> to vector<128xf32>
      %34 = vector.shape_cast %33 : vector<128xf32> to vector<1x128xf32>
      %cst_28 = arith.constant 8.000000e+00 : f32
      %35 = vector.broadcast %cst_28 : f32 to vector<1x128xf32>
      %36 = arith.divf %34, %35 : vector<1x128xf32>
      %37 = vector.broadcast %36 : vector<1x128xf32> to vector<8x128xf32>
      %38 = arith.subf %32, %37 : vector<8x128xf32>
      %39 = arith.mulf %38, %38 : vector<8x128xf32>
      %cst_29 = arith.constant dense<0.000000e+00> : vector<128xf32>
      %40 = vector.multi_reduction <add>, %39, %cst_29 [0] : vector<8x128xf32> to vector<128xf32>
      %41 = vector.shape_cast %40 : vector<128xf32> to vector<1x128xf32>
      %cst_30 = arith.constant 8.000000e+00 : f32
      %42 = vector.broadcast %cst_30 : f32 to vector<1x128xf32>
      %43 = arith.divf %41, %42 : vector<1x128xf32>
      %44 = vector.broadcast %36 : vector<1x128xf32> to vector<8x128xf32>
      %45 = arith.subf %32, %44 : vector<8x128xf32>
      %cst_31 = arith.constant 9.99999974E-6 : f32
      %46 = vector.broadcast %cst_31 : f32 to vector<1x128xf32>
      %47 = arith.addf %43, %46 : vector<1x128xf32>
      %48 = math.rsqrt %47 : vector<1x128xf32>
      %49 = vector.broadcast %48 : vector<1x128xf32> to vector<8x128xf32>
      %50 = arith.mulf %45, %49 : vector<8x128xf32>
      %51 = vector.broadcast %30 : vector<1x128xf32> to vector<8x128xf32>
      %52 = arith.mulf %50, %51 : vector<8x128xf32>
      %53 = vector.broadcast %31 : vector<1x128xf32> to vector<8x128xf32>
      %54 = arith.addf %52, %53 : vector<8x128xf32>
      %cst_32 = arith.constant 0.000000e+00 : f32
      %55 = vector.broadcast %cst_32 : f32 to vector<8x128xf32>
      %56 = arith.maximumf %54, %55 : vector<8x128xf32>
      %57 = vector.extract_strided_slice %26 {offsets = [8, 0], sizes = [8, 128], strides = [1, 1]} : vector<16x128xf32> to vector<8x128xf32>
      %cst_33 = arith.constant dense<0.000000e+00> : vector<128xf32>
      %58 = vector.multi_reduction <add>, %57, %cst_33 [0] : vector<8x128xf32> to vector<128xf32>
      %59 = vector.shape_cast %58 : vector<128xf32> to vector<1x128xf32>
      %cst_34 = arith.constant 8.000000e+00 : f32
      %60 = vector.broadcast %cst_34 : f32 to vector<1x128xf32>
      %61 = arith.divf %59, %60 : vector<1x128xf32>
      %62 = vector.broadcast %61 : vector<1x128xf32> to vector<8x128xf32>
      %63 = arith.subf %57, %62 : vector<8x128xf32>
      %64 = arith.mulf %63, %63 : vector<8x128xf32>
      %cst_35 = arith.constant dense<0.000000e+00> : vector<128xf32>
      %65 = vector.multi_reduction <add>, %64, %cst_35 [0] : vector<8x128xf32> to vector<128xf32>
      %66 = vector.shape_cast %65 : vector<128xf32> to vector<1x128xf32>
      %cst_36 = arith.constant 8.000000e+00 : f32
      %67 = vector.broadcast %cst_36 : f32 to vector<1x128xf32>
      %68 = arith.divf %66, %67 : vector<1x128xf32>
      %69 = vector.broadcast %61 : vector<1x128xf32> to vector<8x128xf32>
      %70 = arith.subf %57, %69 : vector<8x128xf32>
      %cst_37 = arith.constant 9.99999974E-6 : f32
      %71 = vector.broadcast %cst_37 : f32 to vector<1x128xf32>
      %72 = arith.addf %68, %71 : vector<1x128xf32>
      %73 = math.rsqrt %72 : vector<1x128xf32>
      %74 = vector.broadcast %73 : vector<1x128xf32> to vector<8x128xf32>
      %75 = arith.mulf %70, %74 : vector<8x128xf32>
      %76 = vector.broadcast %30 : vector<1x128xf32> to vector<8x128xf32>
      %77 = arith.mulf %75, %76 : vector<8x128xf32>
      %78 = vector.broadcast %31 : vector<1x128xf32> to vector<8x128xf32>
      %79 = arith.addf %77, %78 : vector<8x128xf32>
      %cst_38 = arith.constant 0.000000e+00 : f32
      %80 = vector.broadcast %cst_38 : f32 to vector<8x128xf32>
      %81 = arith.maximumf %79, %80 : vector<8x128xf32>
      %c0_39 = arith.constant 0 : index
      %c0_40 = arith.constant 0 : index
      %82 = vector.load %arg6[%c0_39, %c0_40] : memref<1x128xf32, #tpu.memory_space<vmem>>, vector<1x128xf32>
      %c0_41 = arith.constant 0 : index
      %c0_42 = arith.constant 0 : index
      %83 = vector.load %arg7[%c0_41, %c0_42] : memref<1x128xf32, #tpu.memory_space<vmem>>, vector<1x128xf32>
      %cst_43 = arith.constant dense<0.000000e+00> : vector<128xf32>
      %84 = vector.multi_reduction <add>, %29, %cst_43 [0] : vector<16x128xf32> to vector<128xf32>
      %85 = vector.shape_cast %84 : vector<128xf32> to vector<1x128xf32>
      %cst_44 = arith.constant 1.600000e+01 : f32
      %86 = vector.broadcast %cst_44 : f32 to vector<1x128xf32>
      %87 = arith.divf %85, %86 : vector<1x128xf32>
      %88 = vector.broadcast %87 : vector<1x128xf32> to vector<16x128xf32>
      %89 = arith.subf %29, %88 : vector<16x128xf32>
      %90 = arith.mulf %89, %89 : vector<16x128xf32>
      %cst_45 = arith.constant dense<0.000000e+00> : vector<128xf32>
      %91 = vector.multi_reduction <add>, %90, %cst_45 [0] : vector<16x128xf32> to vector<128xf32>
      %92 = vector.shape_cast %91 : vector<128xf32> to vector<1x128xf32>
      %cst_46 = arith.constant 1.600000e+01 : f32
      %93 = vector.broadcast %cst_46 : f32 to vector<1x128xf32>
      %94 = arith.divf %92, %93 : vector<1x128xf32>
      %95 = vector.broadcast %87 : vector<1x128xf32> to vector<16x128xf32>
      %96 = arith.subf %29, %95 : vector<16x128xf32>
      %cst_47 = arith.constant 9.99999974E-6 : f32
      %97 = vector.broadcast %cst_47 : f32 to vector<1x128xf32>
      %98 = arith.addf %94, %97 : vector<1x128xf32>
      %99 = math.rsqrt %98 : vector<1x128xf32>
      %100 = vector.broadcast %99 : vector<1x128xf32> to vector<16x128xf32>
      %101 = arith.mulf %96, %100 : vector<16x128xf32>
      %102 = vector.broadcast %82 : vector<1x128xf32> to vector<16x128xf32>
      %103 = arith.mulf %101, %102 : vector<16x128xf32>
      %104 = vector.broadcast %83 : vector<1x128xf32> to vector<16x128xf32>
      %105 = arith.addf %103, %104 : vector<16x128xf32>
      %cst_48 = arith.constant 0.000000e+00 : f32
      %106 = vector.broadcast %cst_48 : f32 to vector<16x128xf32>
      %107 = arith.maximumf %105, %106 : vector<16x128xf32>
      %108 = tpu.concatenate %56, %81, %107 in 0 : vector<8x128xf32>, vector<8x128xf32>, vector<16x128xf32> -> vector<32x128xf32>
      %109 = arith.truncf %108 : vector<32x128xf32> to vector<32x128xbf16>
      %c0_49 = arith.constant 0 : index
      %c0_50 = arith.constant 0 : index
      %110 = vector.load %arg10[%c0_49, %c0_50] : memref<128x256xbf16, #tpu.memory_space<vmem>>, vector<128x256xbf16>
      %cst_51 = arith.constant dense<0.000000e+00> : vector<32x256xf32>
      %111 = tpu.matmul %109, %110, %cst_51 {dimension_numbers = #tpu.dot_dimension_numbers<[1], [0], [0], [1], [0, 0, 1, 1], [], []>} : vector<32x128xbf16>, vector<128x256xbf16>, vector<32x256xf32> -> vector<32x256xf32>
      %c0_52 = arith.constant 0 : index
      %c0_53 = arith.constant 0 : index
      %112 = vector.load %arg11[%c0_52, %c0_53] : memref<1x256xf32, #tpu.memory_space<vmem>>, vector<1x256xf32>
      %113 = vector.broadcast %112 : vector<1x256xf32> to vector<32x256xf32>
      %114 = arith.addf %111, %113 : vector<32x256xf32>
      %115 = vector.extract_strided_slice %114 {offsets = [0, 0], sizes = [16, 128], strides = [1, 1]} : vector<32x256xf32> to vector<16x128xf32>
      %116 = arith.mulf %115, %115 : vector<16x128xf32>
      %cst_54 = arith.constant dense<0.000000e+00> : vector<16xf32>
      %117 = vector.multi_reduction <add>, %116, %cst_54 [1] : vector<16x128xf32> to vector<16xf32>
      %118 = vector.shape_cast %117 : vector<16xf32> to vector<16x1xf32>
      %cst_55 = arith.constant 1.000000e-24 : f32
      %119 = vector.broadcast %cst_55 : f32 to vector<16x1xf32>
      %120 = arith.maximumf %118, %119 : vector<16x1xf32>
      %121 = math.rsqrt %120 : vector<16x1xf32>
      %122 = vector.broadcast %121 : vector<16x1xf32> to vector<16x128xf32>
      %123 = arith.mulf %115, %122 : vector<16x128xf32>
      %c0_56 = arith.constant 0 : index
      %c0_57 = arith.constant 0 : index
      %124 = vector.load %arg13[%c0_56, %c0_57] : memref<16x128xf32, #tpu.memory_space<vmem>>, vector<16x128xf32>
      tpu.vector_store %arg13[%c0_56, %c0_57], %123 {strides = array<i32>} : memref<16x128xf32, #tpu.memory_space<vmem>>, vector<16x128xf32>,
      %125 = vector.extract_strided_slice %114 {offsets = [16, 128], sizes = [16, 128], strides = [1, 1]} : vector<32x256xf32> to vector<16x128xf32>
      %126 = arith.mulf %125, %125 : vector<16x128xf32>
      %cst_58 = arith.constant dense<0.000000e+00> : vector<16xf32>
      %127 = vector.multi_reduction <add>, %126, %cst_58 [1] : vector<16x128xf32> to vector<16xf32>
      %128 = vector.shape_cast %127 : vector<16xf32> to vector<16x1xf32>
      %cst_59 = arith.constant 1.000000e-24 : f32
      %129 = vector.broadcast %cst_59 : f32 to vector<16x1xf32>
      %130 = arith.maximumf %128, %129 : vector<16x1xf32>
      %131 = math.rsqrt %130 : vector<16x1xf32>
      %132 = vector.broadcast %131 : vector<16x1xf32> to vector<16x128xf32>
      %133 = arith.mulf %125, %132 : vector<16x128xf32>
      %c0_60 = arith.constant 0 : index
      %c0_61 = arith.constant 0 : index
      %134 = vector.load %arg14[%c0_60, %c0_61] : memref<16x128xf32, #tpu.memory_space<vmem>>, vector<16x128xf32>
      tpu.vector_store %arg14[%c0_60, %c0_61], %133 {strides = array<i32>} : memref<16x128xf32, #tpu.memory_space<vmem>>, vector<16x128xf32>,
    } else {
    }
    return
  }
  func.func @transform_0(%arg0: i32) -> (i32, i32) {
    %c0_i32 = arith.constant 0 : i32
    %c0_i32_0 = arith.constant 0 : i32
    return %c0_i32, %arg0 : i32, i32
  }
  func.func @transform_1(%arg0: i32) -> (i32, i32) {
    %c0_i32 = arith.constant 0 : i32
    %c0_i32_0 = arith.constant 0 : i32
    return %arg0, %c0_i32 : i32, i32
  }
  func.func @transform_2(%arg0: i32) -> (i32, i32) {
    %c0_i32 = arith.constant 0 : i32
    %c0_i32_0 = arith.constant 0 : i32
    %c0_i32_1 = arith.constant 0 : i32
    return %c0_i32, %c0_i32_0 : i32, i32
  }
  func.func @transform_3(%arg0: i32) -> (i32, i32) {
    %c0_i32 = arith.constant 0 : i32
    %c0_i32_0 = arith.constant 0 : i32
    %c0_i32_1 = arith.constant 0 : i32
    return %c0_i32, %c0_i32_0 : i32, i32
  }
  func.func @transform_4(%arg0: i32) -> (i32, i32) {
    %c0_i32 = arith.constant 0 : i32
    %c0_i32_0 = arith.constant 0 : i32
    %c0_i32_1 = arith.constant 0 : i32
    return %c0_i32, %c0_i32_0 : i32, i32
  }
  func.func @transform_5(%arg0: i32) -> (i32, i32) {
    %c0_i32 = arith.constant 0 : i32
    %c0_i32_0 = arith.constant 0 : i32
    %c0_i32_1 = arith.constant 0 : i32
    return %c0_i32, %c0_i32_0 : i32, i32
  }
  func.func @transform_6(%arg0: i32) -> (i32, i32) {
    %c0_i32 = arith.constant 0 : i32
    %c0_i32_0 = arith.constant 0 : i32
    %c0_i32_1 = arith.constant 0 : i32
    return %c0_i32, %c0_i32_0 : i32, i32
  }
  func.func @transform_7(%arg0: i32) -> (i32, i32) {
    %c0_i32 = arith.constant 0 : i32
    %c0_i32_0 = arith.constant 0 : i32
    %c0_i32_1 = arith.constant 0 : i32
    return %c0_i32, %c0_i32_0 : i32, i32
  }
  func.func @transform_8(%arg0: i32) -> (i32, i32) {
    %c0_i32 = arith.constant 0 : i32
    %c0_i32_0 = arith.constant 0 : i32
    %c0_i32_1 = arith.constant 0 : i32
    return %c0_i32, %c0_i32_0 : i32, i32
  }
  func.func @transform_9(%arg0: i32) -> (i32, i32) {
    %c0_i32 = arith.constant 0 : i32
    %c0_i32_0 = arith.constant 0 : i32
    %c0_i32_1 = arith.constant 0 : i32
    return %c0_i32, %c0_i32_0 : i32, i32
  }
  func.func @transform_10(%arg0: i32) -> (i32, i32) {
    %c0_i32 = arith.constant 0 : i32
    %c0_i32_0 = arith.constant 0 : i32
    %c0_i32_1 = arith.constant 0 : i32
    return %c0_i32, %c0_i32_0 : i32, i32
  }
  func.func @transform_11(%arg0: i32) -> (i32, i32) {
    %c0_i32 = arith.constant 0 : i32
    %c0_i32_0 = arith.constant 0 : i32
    %c0_i32_1 = arith.constant 0 : i32
    return %c0_i32, %c0_i32_0 : i32, i32
  }
  func.func @transform_12(%arg0: i32) -> (i32, i32) {
    %c0_i32 = arith.constant 0 : i32
    %c0_i32_0 = arith.constant 0 : i32
    %c0_i32_1 = arith.constant 0 : i32
    return %c0_i32, %c0_i32_0 : i32, i32
  }
  func.func @transform_13(%arg0: i32) -> (i32, i32) {
    %c0_i32 = arith.constant 0 : i32
    %c0_i32_0 = arith.constant 0 : i32
    %c0_i32_1 = arith.constant 0 : i32
    return %c0_i32, %c0_i32_0 : i32, i32
  }
  func.func @transform_14(%arg0: i32) -> (i32, i32) {
    %c0_i32 = arith.constant 0 : i32
    %c0_i32_0 = arith.constant 0 : i32
    %c0_i32_1 = arith.constant 0 : i32
    return %c0_i32, %c0_i32_0 : i32, i32
  }
}

</mosaic_0001>

<bundles_post_ra>
// kernel: bcl_forward.1
= control target key start
LH: loop header
LB: loop body
LE: loop exit
PB: predicated region body
PF: predicated region fallthrough
CT: control target
= control target key end

     0   :  { %20 = vsyncpa [#allocation5], 0  ;;  %s2500_s0 = inlined_call_operand.vmem [shape: bf16[24,1024], index: 0, kind: input, shape index: {}]   ;;  %s2501_s1 = inlined_call_operand.vmem [shape: bf16[1024,128], index: 1, kind: input, shape index: {}]   ;;  %s2502_s2 = inlined_call_operand.vmem [shape: f32[1,128], index: 2, kind: input, shape index: {}]   ;;  %s2503_s3 = inlined_call_operand.vmem [shape: f32[1,128], index: 3, kind: input, shape index: {}]   ;;  %s2504_s4 = inlined_call_operand.vmem [shape: f32[1,128], index: 4, kind: input, shape index: {}]   ;;  %s2505_s5 = inlined_call_operand.vmem [shape: f32[1,128], index: 5, kind: input, shape index: {}]   ;;  %s2506_s6 = inlined_call_operand.vmem [shape: f32[1,128], index: 6, kind: input, shape index: {}]   ;;  %s2507_s7 = inlined_call_operand.vmem [shape: bf16[128,384], index: 7, kind: input, shape index: {}]   ;;  %s2508_s8 = inlined_call_operand.vmem [shape: f32[1,384], index: 8, kind: input, shape index: {}]   ;;  %s2509_s9 = inlined_call_operand.vmem [shape: bf16[128,256], index: 9, kind: input, shape index: {}]   ;;  %s2510_s10 = inlined_call_operand.vmem [shape: f32[1,256], index: 10, kind: input, shape index: {}]   ;;  %s2511_s11 = inlined_call_operand.vmem [shape: bf16[16,128], index: 11, kind: input, shape index: {}]   ;;  %s2512_s12 = inlined_call_operand.vmem [shape: f32[16,128], index: 12, kind: output, shape index: {0}]   ;;  %s2513_s13 = inlined_call_operand.hbm [shape: f32[16,128], index: 13, kind: output, shape index: {1}]   ;;  %s2514_s14 = inlined_call_operand.hbm [shape: f32[8,128], index: 14, kind: output, shape index: {2}]  }
   0x1   :  { %21 = vsyncpa [#allocation7], 0  ;;  %s2160_s29 = smov 0   ;;  %s2162_s30 = smov 0  }
   0x2   :  { %s2164_s15 = smov 0  }
   0x3 LB: > { %s2176_s16 = sadd.s32 4294967295, %s2075_s15   ;;  %s2179_s17 = sadd.s32 1, %s2075_s15   ;;  %s2075_s15 = sphi %s2164_s15, %s2517_s15   ;;  %s2071_s30 = sphi %s2162_s30, %s2516_s30   ;;  %s2067_s29 = sphi %s2160_s29, %s2515_s29  }
   0x4   : > { %s31_s18 = ssub.s32 %s2075_s15, %s2179_s17  ;;  %s34_s19 = sadd.s32 1, %s2071_s30 }
   0x5   : > { %p32_p0 = scmp.eq.s32.totalorder %s31_s18, 0  ;;  %p41_p1 = scmp.ne.s32.totalorder %s2071_s30, %s2067_s29 }
   0x6   : > { %p42_p2 = scmp.eq.s32.totalorder %s2075_s15, 0  ;;  %p1620_p4 = scmp.ge.s32.totalorder %s2075_s15, 2 }
   0x7   : > { %s2188_s20 = scalar_select %p32_p0, %s2071_s30, %s34_s19  }
   0x8   : > { %p43_p3 = por %p42_p2, %p41_p1  ;;  %396 = sbr.rel (%p1620_p4) target bundleno = 22 (0x16), region = 56 }
   0xf   : > { %399 = sbr.rel (!%p43_p3) target bundleno = 22 (0x16), region = 60  ;;  %s401_s21 = sand.u32 (%p43_p3), 1, %s2071_s30  }
  0x10   : > { %s1721_s22 = sshll.u32 (%p43_p3), %s2075_s15, 4  ;;  %s1833_s23 = smul.u32 (%p43_p3), 48, %s401_s21 }
  0x11   : > { %s406_s26 = scalar_lea.vmem (%p43_p3), %s2500_s0, %s1721_s22 }
  0x12   : > { %v419_v0 = vld [vmem:[%s406_s26] sm:$0xff] (%p43_p3)  ;;  %v421_v1 = vld [vmem:[%s406_s26 + $0x8] sm:$0xff] (%p43_p3)  ;;  %s403_s27 = scalar_lea.vmem (%p43_p3), [#allocation3], %s1833_s23 }
  0x13   : > { %v423_v2 = vld [vmem:[%s406_s26 + $0x20] sm:$0xff] (%p43_p3)  ;;  %v425_v3 = vld [vmem:[%s406_s26 + $0x28] sm:$0xff] (%p43_p3)  ;;  %420 = vst [vmem:[%s403_s27] sm:$0xff] (%p43_p3), %v419_v0  ;;  %422 = vst [vmem:[%s403_s27 + $0x8] sm:$0xff] (%p43_p3), %v421_v1 }
  0x14   : > { %v427_v4 = vld [vmem:[%s406_s26 + $0x40] sm:$0xff] (%p43_p3)  ;;  %v429_v5 = vld [vmem:[%s406_s26 + $0x48] sm:$0xff] (%p43_p3)  ;;  %424 = vst [vmem:[%s403_s27 + $0x10] sm:$0xff] (%p43_p3), %v423_v2  ;;  %426 = vst [vmem:[%s403_s27 + $0x18] sm:$0xff] (%p43_p3), %v425_v3 }
  0x15   : > { %428 = vst [vmem:[%s403_s27 + $0x20] sm:$0xff] (%p43_p3), %v427_v4  ;;  %430 = vst [vmem:[%s403_s27 + $0x28] sm:$0xff] (%p43_p3), %v429_v5 }
  0x16 PF: > { %p1623_p5 = scmp.ge.s32.totalorder %s2075_s15, 1  ;;  %p444_p6 = scmp.lt.s32.totalorder %s2075_s15, 3 }
  0x18   : > { %p445_p7 = pnand %p1623_p5, %p444_p6 }
  0x19   : > { %s451_s28 = sand.u32 (!%p445_p7), 1, %s2067_s29   ;;  %s1624_s18 = sshll.u32 (!%p445_p7), %s2176_s16, 6 }
  0x1a   : > { %448 = sbr.rel (%p445_p7) target bundleno = 1030 (0x406), region = 87  ;;  %p498_p8 = scmp.lt.s32.totalorder (!%p445_p7), %s1624_s18, 127 }
  0x1b   : > { %s1834_s19 = smul.u32 (!%p445_p7), 48, %s451_s28  ;;  %p1626_p9 = scmp.ne.s32.totalorder (!%p445_p7), %s2176_s16, 0 }
  0x1d   : > { %s2205_s25 = scalar_lea.vmem (!%p445_p7), [#allocation3], %s1834_s19 }
  0x21   : > { %s2519_s18 = smov (!%p498_p8, %s1624_s18), 127  ;;  %507 = sbr.rel (%p1626_p9) target bundleno = 40 (0x28), region = 95 }
  0x22   : > { %s1625_s21 = sshll.u32 %s2519_s18, 2  ;;  %v2077_v6 = vmov (!%p1626_p9), 0.0  }
  0x23   : > { %s2203_s24 = scalar_lea.vmem %s2501_s1, %s1625_s21  ;;  %508 = vst [vmem:[#allocation2] sm:$0xff] (!%p1626_p9), %v2077_v6  ;;  %509 = vst [vmem:[#allocation2 + $0x8] sm:$0xff] (!%p1626_p9), %v2077_v6 }
  0x24   : > { %510 = vst [vmem:[#allocation2 + $0x10] sm:$0xff] (!%p1626_p9), %v2077_v6 }
  0x28 PF: > { %v1879_v7 = vld [vmem:[%s2203_s24 + $0x40] sm:$0xff]   ;;  %v1883_v11 = vld [vmem:[%s2203_s24 + $0x48] sm:$0xff]   ;;  %v1887_v15 = vld [vmem:[%s2203_s24 + $0x50] sm:$0xff]   ;;  %p1667_p10 = scmp.ne.s32.totalorder %s2176_s16, 1 }
  0x29   : > { %v1880_v8 = vld [vmem:[%s2203_s24 + $0xc0] sm:$0xff]   ;;  %1722 = vmatprep.subr.bf16.mxu0 %v1879_v7  ;;  %v1884_v12 = vld [vmem:[%s2203_s24 + $0xc8] sm:$0xff]   ;;  %v1888_v16 = vld [vmem:[%s2203_s24 + $0xd0] sm:$0xff]   ;;  %vm943_vm0 = vcmask (!%p1667_p10), 1043456   ;;  %vm2080_vm1 = vmmov (!%p1667_p10), 0  }
  0x2a   : > { %v1881_v9 = vld [vmem:[%s2203_s24] sm:$0xff]   ;;  %1750 = vmatprep.subr.bf16.mxu1 %v1880_v8  ;;  %v1885_v13 = vld [vmem:[%s2203_s24 + $0x8] sm:$0xff]   ;;  %v1889_v17 = vld [vmem:[%s2203_s24 + $0x10] sm:$0xff]  }
  0x2b   : > { %v1882_v10 = vld [vmem:[%s2203_s24 + $0x80] sm:$0xff]   ;;  %1723 = vmatpush3.bf16.msra.mxu0 %v1881_v9  ;;  %v1886_v14 = vld [vmem:[%s2203_s24 + $0x88] sm:$0xff]   ;;  %v1890_v18 = vld [vmem:[%s2203_s24 + $0x90] sm:$0xff]  }
  0x2c   : > { %1751 = vmatpush3.bf16.msra.mxu1 %v1882_v10  ;;  %1724 = vmatprep.subr.bf16.mxu0 %v1883_v11  ;;  %v1891_v19 = vld [vmem:[%s2203_s24 + $0x58] sm:$0xff]   ;;  %v1895_v23 = vld [vmem:[%s2203_s24 + $0x60] sm:$0xff]   ;;  %v1899_v27 = vld [vmem:[%s2203_s24 + $0x68] sm:$0xff]  }
  0x2d   : > { %1752 = vmatprep.subr.bf16.mxu1 %v1884_v12  ;;  %v1892_v20 = vld [vmem:[%s2203_s24 + $0xd8] sm:$0xff]   ;;  %v1896_v24 = vld [vmem:[%s2203_s24 + $0xe0] sm:$0xff]   ;;  %v1900_v28 = vld [vmem:[%s2203_s24 + $0xe8] sm:$0xff]  }
  0x2e   : > { %v1893_v21 = vld [vmem:[%s2203_s24 + $0x18] sm:$0xff]   ;;  %v1897_v25 = vld [vmem:[%s2203_s24 + $0x20] sm:$0xff]   ;;  %v1901_v29 = vld [vmem:[%s2203_s24 + $0x28] sm:$0xff]  }
  0x2f   : > { %1725 = vmatpush3.bf16.msra.mxu0 %v1885_v13  ;;  %v1894_v22 = vld [vmem:[%s2203_s24 + $0x98] sm:$0xff]   ;;  %v1898_v26 = vld [vmem:[%s2203_s24 + $0xa0] sm:$0xff]   ;;  %v1902_v30 = vld [vmem:[%s2203_s24 + $0xa8] sm:$0xff]  }
  0x30   : > { %1753 = vmatpush3.bf16.msra.mxu1 %v1886_v14  ;;  %1726 = vmatprep.subr.bf16.mxu0 %v1887_v15  ;;  %v1903_v31 = vld [vmem:[%s2203_s24 + $0x70] sm:$0xff]   ;;  %v1907_v35 = vld [vmem:[%s2203_s24 + $0x78] sm:$0xff]   ;;  %v511_v58 = vld [vmem:[#allocation2] sm:$0xff] }
  0x31   : > { %1754 = vmatprep.subr.bf16.mxu1 %v1888_v16  ;;  %v1904_v32 = vld [vmem:[%s2203_s24 + $0xf0] sm:$0xff]   ;;  %v1908_v36 = vld [vmem:[%s2203_s24 + $0xf8] sm:$0xff]   ;;  %v512_v63 = vld [vmem:[#allocation2 + $0x8] sm:$0xff] }
  0x32   : > { %v1905_v33 = vld [vmem:[%s2203_s24 + $0x30] sm:$0xff]   ;;  %v1909_v37 = vld [vmem:[%s2203_s24 + $0x38] sm:$0xff]  }
  0x33   : > { %1727 = vmatpush3.bf16.msra.mxu0 %v1889_v17  ;;  %v1906_v34 = vld [vmem:[%s2203_s24 + $0xb0] sm:$0xff]   ;;  %v1910_v38 = vld [vmem:[%s2203_s24 + $0xb8] sm:$0xff]   ;;  %v1923_v17 = vld [vmem:[%s2507_s7] ss:$12 sps:$4 sm:$0xff] (!%p1667_p10)  }
  0x34   : > { %1755 = vmatpush3.bf16.msra.mxu1 %v1890_v18  ;;  %1728 = vmatprep.subr.bf16.mxu0 %v1891_v19  ;;  %v1911_v39 = vld [vmem:[%s2205_s25] ss:$16 sps:$4 sm:$0xff]   ;;  %v1913_v40 = vld [vmem:[%s2205_s25 + $0x4] ss:$16 sps:$4 sm:$0xff]   ;;  %v1914_v41 = vld [vmem:[%s2205_s25 + $0x8] ss:$16 sps:$4 sm:$0xff]  }
  0x35   : > { %1756 = vmatprep.subr.bf16.mxu1 %v1892_v20  ;;  %v1916_v42 = vld [vmem:[%s2205_s25 + $0xc] ss:$16 sps:$4 sm:$0xff]   ;;  %v518_v43 = vld [vmem:[%s2205_s25 + $0x20] sm:$0xff]  ;;  %842 = vmatprep.mubr.bf16.mxu0 %v1913_v40  ;;  %v2078_v18 = vmov (!%p1667_p10), 0  }
  0x36   : > { %v1632_v44 = vcombine.high %v518_v43, %v518_v43  ;;  %v519_v45 = vld [vmem:[%s2205_s25 + $0x28] sm:$0xff]  ;;  %890 = vmatprep.mubr.bf16.mxu1 %v1916_v42  ;;  %v1631_v47 = vcombine.low %v518_v43, %v518_v43  ;;  %v1924_v19 = vld [vmem:[%s2507_s7 + $0x1c] ss:$12 sps:$4 sm:$0xff] (!%p1667_p10)  }
  0x37   : > { %1729 = vmatpush3.bf16.msra.mxu0 %v1893_v21  ;;  %v1634_v46 = vcombine.high %v519_v45, %v519_v45  ;;  %v1633_v48 = vcombine.low %v519_v45, %v519_v45  ;;  %v513_v12 = vld [vmem:[#allocation2 + $0x10] sm:$0xff]  ;;  %v1926_v20 = vld [vmem:[%s2507_s7 + $0x18] ss:$12 sps:$4 sm:$0xff] (!%p1667_p10)   ;;  %v1945_v45 = vld [vmem:[%s2511_s11] ss:$0 sps:$4 sm:$0xff] (!%p1667_p10)  }
  0x38   : > { %1757 = vmatpush3.bf16.msra.mxu1 %v1894_v22  ;;  %1730 = vmatprep.subr.bf16.mxu0 %v1895_v23  ;;  %v1921_v16 = vld [vmem:[%s2507_s7 + $0x4] ss:$12 sps:$4 sm:$0xff] (!%p1667_p10)   ;;  %v1927_v21 = vld [vmem:[%s2507_s7 + $0x34] ss:$12 sps:$4 sm:$0xff] (!%p1667_p10)   ;;  %v1930_v23 = vld [vmem:[%s2507_s7 + $0x4c] ss:$12 sps:$4 sm:$0xff] (!%p1667_p10)  }
  0x39   : > { %1758 = vmatprep.subr.bf16.mxu1 %v1896_v24  ;;  %v1929_v22 = vld [vmem:[%s2507_s7 + $0x30] ss:$12 sps:$4 sm:$0xff] (!%p1667_p10)   ;;  %v1932_v24 = vld [vmem:[%s2507_s7 + $0x48] ss:$12 sps:$4 sm:$0xff] (!%p1667_p10)  }
  0x3a   : > { %v1944_v40 = vld [vmem:[%s2507_s7 + $0xa8] ss:$12 sps:$4 sm:$0xff] (!%p1667_p10)  }
  0x3b   : > { %1731 = vmatpush3.bf16.msra.mxu0 %v1897_v25  ;;  %v1933_v25 = vld [vmem:[%s2507_s7 + $0x64] ss:$12 sps:$4 sm:$0xff] (!%p1667_p10)  }
  0x3c   : > { %1759 = vmatpush3.bf16.msra.mxu1 %v1898_v26  ;;  %1732 = vmatprep.subr.bf16.mxu0 %v1899_v27  ;;  %v1935_v26 = vld [vmem:[%s2507_s7 + $0x60] ss:$12 sps:$4 sm:$0xff] (!%p1667_p10)   ;;  %v1936_v27 = vld [vmem:[%s2507_s7 + $0x7c] ss:$12 sps:$4 sm:$0xff] (!%p1667_p10)  }
  0x3d   : > { %1760 = vmatprep.subr.bf16.mxu1 %v1900_v28  ;;  %v1938_v28 = vld [vmem:[%s2507_s7 + $0x78] ss:$12 sps:$4 sm:$0xff] (!%p1667_p10)  }
  0x3f   : > { %1733 = vmatpush3.bf16.msra.mxu0 %v1901_v29 }
  0x40   : > { %1761 = vmatpush3.bf16.msra.mxu1 %v1902_v30  ;;  %1734 = vmatprep.subr.bf16.mxu0 %v1903_v31  ;;  %v1668_v31 = vld [vmem:[%s2502_s2] ss:$0 sm:$0xff] (!%p1667_p10) }
  0x41   : > { %1762 = vmatprep.subr.bf16.mxu1 %v1904_v32  ;;  %v1939_v32 = vld [vmem:[%s2507_s7 + $0x94] ss:$12 sps:$4 sm:$0xff] (!%p1667_p10)  }
  0x43   : > { %1735 = vmatpush3.bf16.msra.mxu0 %v1905_v33  ;;  %v1941_v33 = vld [vmem:[%s2507_s7 + $0x90] ss:$12 sps:$4 sm:$0xff] (!%p1667_p10)  }
  0x44   : > { %1763 = vmatpush3.bf16.msra.mxu1 %v1906_v34  ;;  %1736 = vmatprep.subr.bf16.mxu0 %v1907_v35  ;;  %v1942_v34 = vld [vmem:[%s2507_s7 + $0xac] ss:$12 sps:$4 sm:$0xff] (!%p1667_p10)  }
  0x45   : > { %1764 = vmatprep.subr.bf16.mxu1 %v1908_v36 }
  0x47   : > { %1737 = vmatpush3.bf16.msra.mxu0 %v1909_v37 }
  0x48   : > { %1765 = vmatpush3.bf16.msra.mxu1 %v1910_v38  ;;  %1125 = vmatprep.subr.bf16.mxu0 (!%p1667_p10), %v1921_v16 }
  0x4a   : > { %843 = vmatmul.mubr.bf16.vlgmr.msra.gmra.mrb[0].mxu0 %v1911_v39 }
  0x4b   : > { %891 = vmatmul.mubr.bf16.vlgmr.msra.gmra.mrb[0].mxu1 %v1914_v41  ;;  %850 = vmatprep.mubr.bf16.mxu0 %v1632_v44 }
  0x4c   : > { %898 = vmatprep.mubr.bf16.mxu1 %v1634_v46  ;;  %1126 = vmatpush1.bf16.msra.mxu0 (!%p1667_p10), %v1923_v17 }
  0x4d   : > { %1127 = vmatprep.subr.bf16.mxu0 (!%p1667_p10), %v1924_v19 }
  0x50   : > { %1128 = vmatpush1.bf16.msra.mxu0 (!%p1667_p10), %v1926_v20 }
  0x51   : > { %1129 = vmatprep.subr.bf16.mxu0 (!%p1667_p10), %v1927_v21 }
  0x52   : > { %851 = vmatmul.mubr.bf16.gmra.mrb[4].mxu0 %v1631_v47  ;;  %v2310_v47 = vld [vmem:[%s2511_s11 + $0x4] ss:$0 sps:$4 sm:$0xff] (!%p1667_p10)  }
  0x53   : > { %899 = vmatmul.mubr.bf16.gmra.mrb[4].mxu1 %v1633_v48  ;;  %1157 = vmatprep.mubr.bf16.mxu0 (!%p1667_p10), %v2078_v18  ;;  %v1947_v48 = vld [vmem:[%s2507_s7 + $0x8] ss:$12 sps:$4 sm:$0xff] (!%p1667_p10)  }
  0x54   : > { %1130 = vmatpush1.bf16.msra.mxu0 (!%p1667_p10), %v1929_v22 }
  0x55   : > { %1131 = vmatprep.subr.bf16.mxu0 (!%p1667_p10), %v1930_v23 }
  0x58   : > { %1132 = vmatpush1.bf16.msra.mxu0 (!%p1667_p10), %v1932_v24 }
  0x59   : > { %1133 = vmatprep.subr.bf16.mxu0 (!%p1667_p10), %v1933_v25 }
  0x5c   : > { %1134 = vmatpush1.bf16.msra.mxu0 (!%p1667_p10), %v1935_v26 }
  0x5d   : > { %1135 = vmatprep.subr.bf16.mxu0 (!%p1667_p10), %v1936_v27 }
  0x60   : > { %1136 = vmatpush1.bf16.msra.mxu0 (!%p1667_p10), %v1938_v28 }
  0x61   : > { %1137 = vmatprep.subr.bf16.mxu0 (!%p1667_p10), %v1939_v32 }
  0x64   : > { %1138 = vmatpush1.bf16.msra.mxu0 (!%p1667_p10), %v1941_v33 }
  0x65   : > { %1139 = vmatprep.subr.bf16.mxu0 (!%p1667_p10), %v1942_v34 }
  0x68   : > { %1140 = vmatpush1.bf16.msra.mxu0 (!%p1667_p10), %v1944_v40 }
 0x11d   : > { %v1738_v49 = vpop.f32.mrb[0].mxu0 }
 0x11e   : > { %v1766_v50 = vpop.f32.mrb[0].mxu1  ;;  %v1739_v51 = vpop.f32.mrb[1].mxu0 }
 0x11f   : > { %v1740_v52 = vadd.f32 %v1739_v51, %v1738_v49  ;;  %v1767_v53 = vpop.f32.mrb[1].mxu1  ;;  %v1741_v54 = vpop.f32.mrb[2].mxu0  ;;  %v2079_v49 = vmov (!%p1667_p10), 0.0   ;;  %v1949_v51 = vld [vmem:[%s2507_s7 + $0x38] ss:$12 sps:$4 sm:$0xff] (!%p1667_p10)  }
 0x120   : > { %v1768_v55 = vadd.f32 %v1767_v53, %v1766_v50  ;;  %v1769_v56 = vpop.f32.mrb[2].mxu1  ;;  %v1742_v57 = vpop.f32.mrb[3].mxu0  ;;  %1789 = vmatprep.subr.bf16.mxu1 (!%p1667_p10), %v2079_v49  ;;  %v1948_v50 = vld [vmem:[%s2507_s7 + $0x20] ss:$12 sps:$4 sm:$0xff] (!%p1667_p10)   ;;  %1805 = vmatprep.mubr.msk.bf16.mxu1 (!%p1667_p10), %vm2080_vm1, %v2079_v49 }
 0x121   : > { %v1743_v59 = vadd.f32 %v1742_v57, %v1741_v54  ;;  %v1770_v60 = vpop.f32.mrb[3].mxu1  ;;  %1790 = vmatpush3.bf16.msra.mxu1 (!%p1667_p10), %v1947_v48  ;;  %v1953_v53 = vld [vmem:[%s2509_s9 + $0x4] ss:$8 sps:$4 sm:$0xff] (!%p1667_p10)   ;;  %v1951_v54 = vld [vmem:[%s2509_s9] ss:$8 sps:$4 sm:$0xff] (!%p1667_p10)  }
 0x122   : > { %v893_v61 = vadd.f32 %v1768_v55, %v1740_v52  ;;  %v1771_v62 = vadd.f32 %v1770_v60, %v1769_v56  ;;  %1791 = vmatprep.subr.bf16.mxu1 (!%p1667_p10), %v2079_v49  ;;  %v1950_v52 = vld [vmem:[%s2507_s7 + $0x50] ss:$12 sps:$4 sm:$0xff] (!%p1667_p10)   ;;  %1447 = vmatprep.subr.bf16.mxu0 (!%p1667_p10), %v1953_v53  ;;  %v1954_v55 = vld [vmem:[%s2507_s7 + $0x68] ss:$12 sps:$4 sm:$0xff] (!%p1667_p10)  }
 0x123   : > { %v1957_v56 = vld [vmem:[%s2509_s9 + $0x14] ss:$8 sps:$4 sm:$0xff] (!%p1667_p10)   ;;  %v1955_v57 = vld [vmem:[%s2509_s9 + $0x10] ss:$8 sps:$4 sm:$0xff] (!%p1667_p10)   ;;  %v1959_v60 = vld [vmem:[%s2509_s9 + $0x20] ss:$8 sps:$4 sm:$0xff] (!%p1667_p10)  }
 0x124   : > { %v906_v0 = vadd.f32 %v893_v61, %v511_v58  ;;  %v896_v1 = vadd.f32 %v1771_v62, %v1743_v59  ;;  %v1958_v58 = vld [vmem:[%s2507_s7 + $0x80] ss:$12 sps:$4 sm:$0xff] (!%p1667_p10)   ;;  %v1962_v61 = vld [vmem:[%s2507_s7 + $0x98] ss:$12 sps:$4 sm:$0xff] (!%p1667_p10)   ;;  %v1965_v62 = vld [vmem:[%s2509_s9 + $0x34] ss:$8 sps:$4 sm:$0xff] (!%p1667_p10)  }
 0x125   : > { %v1744_v2 = vpop.f32.mrb[4].mxu0  ;;  %1792 = vmatpush3.bf16.msra.mxu1 (!%p1667_p10), %v1948_v50  ;;  %v1961_v59 = vld [vmem:[%s2509_s9 + $0x24] ss:$8 sps:$4 sm:$0xff] (!%p1667_p10)  }
 0x126   : > { %909 = vst [vmem:[#allocation2] sm:$0xff] %v906_v0  ;;  %v907_v3 = vadd.f32 %v896_v1, %v512_v63  ;;  %v1772_v4 = vpop.f32.mrb[4].mxu1  ;;  %v1745_v5 = vpop.f32.mrb[5].mxu0  ;;  %1793 = vmatprep.subr.bf16.mxu1 (!%p1667_p10), %v2079_v49  ;;  %v1963_v63 = vld [vmem:[%s2509_s9 + $0x30] ss:$8 sps:$4 sm:$0xff] (!%p1667_p10)  }
 0x127   : > { %v1746_v6 = vadd.f32 %v1745_v5, %v1744_v2  ;;  %v1773_v7 = vpop.f32.mrb[5].mxu1  ;;  %v1747_v8 = vpop.f32.mrb[6].mxu0  ;;  %v1966_v0 = vld [vmem:[%s2507_s7 + $0xb0] ss:$12 sps:$4 sm:$0xff] (!%p1667_p10)   ;;  %v1969_v1 = vld [vmem:[%s2509_s9 + $0x44] ss:$8 sps:$4 sm:$0xff] (!%p1667_p10)  }
 0x128   : > { %910 = vst [vmem:[#allocation2 + $0x8] sm:$0xff] %v907_v3  ;;  %v1774_v9 = vadd.f32 %v1773_v7, %v1772_v4  ;;  %v1775_v10 = vpop.f32.mrb[6].mxu1  ;;  %v1748_v11 = vpop.f32.mrb[7].mxu0  ;;  %915 = sbr.rel (%p1667_p10) target bundleno = 979 (0x3d3), region = 99  ;;  %v1967_v2 = vld [vmem:[%s2509_s9 + $0x40] ss:$8 sps:$4 sm:$0xff] (!%p1667_p10)  }
 0x129   : > { %v1776_v13 = vpop.f32.mrb[7].mxu1  ;;  %1794 = vmatpush3.bf16.msra.mxu1 (!%p1667_p10), %v1949_v51  ;;  %v1972_v3 = vld [vmem:[%s2509_s9 + $0x54] ss:$8 sps:$4 sm:$0xff] (!%p1667_p10)   ;;  %v1970_v4 = vld [vmem:[%s2509_s9 + $0x50] ss:$8 sps:$4 sm:$0xff] (!%p1667_p10)  }
 0x12a   : > { %v901_v14 = vadd.f32 %v1774_v9, %v1746_v6  ;;  %1795 = vmatprep.subr.bf16.mxu1 (!%p1667_p10), %v2079_v49  ;;  %v1975_v5 = vld [vmem:[%s2509_s9 + $0x64] ss:$8 sps:$4 sm:$0xff] (!%p1667_p10)   ;;  %v1973_v6 = vld [vmem:[%s2509_s9 + $0x60] ss:$8 sps:$4 sm:$0xff] (!%p1667_p10)   ;;  %v1978_v7 = vld [vmem:[%s2509_s9 + $0x74] ss:$8 sps:$4 sm:$0xff] (!%p1667_p10)   ;;  %v982_v9 = vlaneseq (!%p1667_p10) }
 0x12b   : > { %v1976_v8 = vld [vmem:[%s2509_s9 + $0x70] ss:$8 sps:$4 sm:$0xff] (!%p1667_p10)  }
 0x12c   : > { %v908_v15 = vadd.f32 %v901_v14, %v513_v12  ;;  %v2403_v10 = vshrl.u32 (!%p1667_p10), %v982_v9, 7  ;;  %v2409_v12 = vld [vmem:[%s2508_s8] sm:$0x7] (!%p1667_p10) }
 0x12d   : > { %v916_v29 = vld [vmem:[#allocation2] sm:$0xff] (!%p1667_p10)  ;;  %1796 = vmatpush3.bf16.msra.mxu1 (!%p1667_p10), %v1950_v52 }
 0x12e   : > { %911 = vst [vmem:[#allocation2 + $0x10] sm:$0xff] %v908_v15  ;;  %v926_v35 = vadd.f32 (!%p1667_p10), %v1668_v31, %v916_v29  ;;  %1797 = vmatprep.subr.bf16.mxu1 (!%p1667_p10), %v2079_v49  ;;  %v984_v11 = vsub.s32 (!%p1667_p10), 0, %v2403_v10 }
 0x12f   : > { %v917_v30 = vld [vmem:[#allocation2 + $0x8] sm:$0xff] }
 0x130   : > { %v927_v36 = vadd.f32 %v1668_v31, %v917_v30  ;;  %v929_v38 = vmax.f32 %v926_v35, 0.0  ;;  %v985_v13 = vrot.slane %v2409_v12, %v984_v11  ;;  %v988_v30 = vsub.s32 1, %v2403_v10 }
 0x131   : > { %1798 = vmatpush3.bf16.msra.mxu1 %v1954_v55 }
 0x132   : > { %v930_v39 = vmax.f32 %v927_v36, 0.0  ;;  %1799 = vmatprep.subr.bf16.mxu1 %v2079_v49  ;;  %v989_v36 = vrot.slane %v2409_v12, %v988_v30 }
 0x134   : > { %v932_v42 = vpack.c.bf16 %v930_v39, %v929_v38 }
 0x135   : > { %v918_v37 = vld [vmem:[#allocation2 + $0x10] sm:$0xff]  ;;  %1800 = vmatpush3.bf16.msra.mxu1 %v1958_v58 }
 0x136   : > { %v928_v41 = vadd.f32 %v1668_v31, %v918_v37  ;;  %1158 = vmatmul.mubr.bf16.vlgmr.msra.gmra.mrb[0].mxu0 %v932_v42  ;;  %1801 = vmatprep.subr.bf16.mxu1 %v2079_v49 }
 0x137   : > { %1165 = vmatprep.mubr.bf16.mxu0 %v2078_v18  ;;  %1448 = vmatpush1.bf16.msra.mxu0 %v1951_v54 }
 0x138   : > { %v931_v43 = vmax.f32 %v928_v41, 0.0  ;;  %1449 = vmatprep.subr.bf16.mxu0 %v1957_v56 }
 0x139   : > { %1802 = vmatpush3.bf16.msra.mxu1 %v1962_v61 }
 0x13a   : > { %v933_v44 = vpack.c.bf16 %v931_v43, %v931_v43  ;;  %1803 = vmatprep.subr.bf16.mxu1 %v2079_v49 }
 0x13b   : > { %1450 = vmatpush1.bf16.msra.mxu0 %v1955_v57 }
 0x13c   : > { %v2303_v46 = vsel %vm943_vm0, %v933_v44, %v1945_v45  ;;  %1451 = vmatprep.subr.bf16.mxu0 %v1961_v59 }
 0x13d   : > { %1804 = vmatpush3.bf16.msra.mxu1 %v1966_v0 }
 0x13e   : > { %1166 = vmatmul.mubr.bf16.gmra.mrb[4].mxu0 %v2303_v46  ;;  %1817 = vmatprep.subr.bf16.mxu1 %v1953_v53 }
 0x13f   : > { %1172 = vmatprep.mubr.bf16.mxu0 %v2078_v18  ;;  %1452 = vmatpush1.bf16.msra.mxu0 %v1959_v60 }
 0x140   : > { %1453 = vmatprep.subr.bf16.mxu0 %v1965_v62  ;;  %1806 = vmatmul.mubr.bf16.vlgmr.msra.gmra.mrb[0].mxu1 %v932_v42 }
 0x141   : > { %1825 = vmatpush1.bf16.msra.mxu1 %v1951_v54  ;;  %1809 = vmatprep.mubr.msk.bf16.mxu1 %vm2080_vm1, %v2079_v49 }
 0x142   : > { %1818 = vmatprep.subr.bf16.mxu1 %v1957_v56 }
 0x143   : > { %1454 = vmatpush1.bf16.msra.mxu0 %v1963_v63 }
 0x144   : > { %1455 = vmatprep.subr.bf16.mxu0 %v1969_v1 }
 0x145   : > { %1826 = vmatpush1.bf16.msra.mxu1 %v1955_v57 }
 0x146   : > { %1173 = vmatmul.mubr.bf16.gmra.mrb[8].mxu0 %v2310_v47  ;;  %1819 = vmatprep.subr.bf16.mxu1 %v1961_v59 }
 0x147   : > { %1479 = vmatprep.mubr.bf16.mxu0 %v2078_v18  ;;  %1456 = vmatpush1.bf16.msra.mxu0 %v1967_v2 }
 0x148   : > { %1457 = vmatprep.subr.bf16.mxu0 %v1972_v3  ;;  %1810 = vmatmul.mubr.bf16.gmra.mrb[4].mxu1 %v2303_v46 }
 0x149   : > { %1827 = vmatpush1.bf16.msra.mxu1 %v1959_v60  ;;  %1813 = vmatprep.mubr.msk.bf16.mxu1 %vm2080_vm1, %v2079_v49 }
 0x14a   : > { %1820 = vmatprep.subr.bf16.mxu1 %v1965_v62 }
 0x14b   : > { %1458 = vmatpush1.bf16.msra.mxu0 %v1970_v4 }
 0x14c   : > { %1459 = vmatprep.subr.bf16.mxu0 %v1975_v5 }
 0x14d   : > { %1828 = vmatpush1.bf16.msra.mxu1 %v1963_v63 }
 0x14e   : > { %1821 = vmatprep.subr.bf16.mxu1 %v1969_v1 }
 0x14f   : > { %1460 = vmatpush1.bf16.msra.mxu0 %v1973_v6 }
 0x150   : > { %1461 = vmatprep.subr.bf16.mxu0 %v1978_v7  ;;  %1814 = vmatmul.mubr.bf16.gmra.mrb[8].mxu1 %v2310_v47 }
 0x151   : > { %1829 = vmatpush1.bf16.msra.mxu1 %v1967_v2  ;;  %1487 = vmatprep.mubr.bf16.mxu1 %v2078_v18 }
 0x152   : > { %1822 = vmatprep.subr.bf16.mxu1 %v1972_v3 }
 0x153   : > { %1462 = vmatpush1.bf16.msra.mxu0 %v1976_v8 }
 0x155   : > { %1830 = vmatpush1.bf16.msra.mxu1 %v1970_v4 }
 0x156   : > { %1823 = vmatprep.subr.bf16.mxu1 %v1975_v5 }
 0x159   : > { %1831 = vmatpush1.bf16.msra.mxu1 %v1973_v6 }
 0x15a   : > { %1824 = vmatprep.subr.bf16.mxu1 %v1978_v7 }
 0x15d   : > { %1832 = vmatpush1.bf16.msra.mxu1 %v1976_v8 }
 0x209   : > { %v1159_v14 = vpop.f32.mrb[0].mxu0 }
 0x20a   : > { %v1160_v15 = vadd.f32 %v1159_v14, %v985_v13  ;;  %v1161_v16 = vpop.f32.mrb[1].mxu0 }
 0x20b   : > { %v1162_v17 = vpop.f32.mrb[2].mxu0 }
 0x20c   : > { %v1235_v18 = vrot.slane %v1160_v15, 4  ;;  %v1163_v19 = vadd.f32 %v1162_v17, %v985_v13  ;;  %v1164_v20 = vpop.f32.mrb[3].mxu0 }
 0x20e   : > { %v1236_v21 = vadd.f32 %v1235_v18, %v1160_v15  ;;  %v1270_v22 = vrot.slane %v1163_v19, 4 }
 0x210   : > { %v1237_v23 = vrot.slane %v1236_v21, 2  ;;  %v1271_v24 = vadd.f32 %v1270_v22, %v1163_v19  ;;  %v1695_v22 = vld [vmem:[%s2503_s3] ss:$0 sm:$0xff] }
 0x211   : > { %v1167_v25 = vpop.f32.mrb[4].mxu0 }
 0x212   : > { %v1238_v26 = vadd.f32 %v1237_v23, %v1236_v21  ;;  %v1272_v27 = vrot.slane %v1271_v24, 2  ;;  %v1168_v28 = vpop.f32.mrb[5].mxu0 }
 0x213   : > { %v1169_v29 = vpop.f32.mrb[6].mxu0 }
 0x214   : > { %v1239_v31 = vrot.slane %v1238_v26, 1  ;;  %v1273_v32 = vadd.f32 %v1272_v27, %v1271_v24  ;;  %v1170_v33 = vpop.f32.mrb[7].mxu0 }
 0x215   : > { %v1171_v43 = vadd.f32 %v1170_v33, %v989_v36 }
 0x216   : > { %v1240_v34 = vadd.f32 %v1239_v31, %v1238_v26  ;;  %v1274_v35 = vrot.slane %v1273_v32, 1  ;;  %v1696_v26 = vld [vmem:[%s2504_s4] ss:$0 sm:$0xff] }
 0x218   : > { %v1242_v37 = vmul.f32 0.125, %v1240_v34  ;;  %v1275_v38 = vadd.f32 %v1274_v35, %v1273_v32 }
 0x219   : > { %v1174_v39 = vpop.f32.mrb[8].mxu0 }
 0x21a   : > { %v1243_v40 = vsub.f32 %v1160_v15, %v1242_v37  ;;  %v1276_v41 = vmul.f32 0.125, %v1275_v38  ;;  %v1175_v42 = vpop.f32.mrb[9].mxu0 }
 0x21b   : > { %v1176_v44 = vadd.f32 %v1175_v42, %v989_v36  ;;  %v1177_v45 = vpop.f32.mrb[10].mxu0 }
 0x21c   : > { %v1244_v46 = vmul.f32 %v1243_v40, %v1243_v40  ;;  %v1277_v47 = vsub.f32 %v1163_v19, %v1276_v41  ;;  %v1178_v48 = vpop.f32.mrb[11].mxu0  ;;  %v1697_v41 = vld [vmem:[%s2505_s5] ss:$0 sm:$0xff] }
 0x21d   : > { %v1294_v49 = vadd.f32 %v1176_v44, %v1171_v43 }
 0x21e   : > { %v1245_v50 = vrot.slane %v1244_v46, 4  ;;  %v1278_v51 = vmul.f32 %v1277_v47, %v1277_v47 }
 0x21f   : > { %v1295_v52 = vrot.slane %v1294_v49, 4 }
 0x220   : > { %v1246_v53 = vadd.f32 %v1245_v50, %v1244_v46  ;;  %v1279_v54 = vrot.slane %v1278_v51, 4 }
 0x221   : > { %v1296_v55 = vadd.f32 %v1295_v52, %v1294_v49  ;;  %v1214_v52 = vpop.f32.mrb[0].mxu1 }
 0x222   : > { %v1247_v56 = vrot.slane %v1246_v53, 2  ;;  %v1280_v57 = vadd.f32 %v1279_v54, %v1278_v51  ;;  %v992_v54 = vsub.s32 2, %v2403_v10 }
 0x223   : > { %v1297_v58 = vrot.slane %v1296_v55, 2 }
 0x224   : > { %v1248_v59 = vadd.f32 %v1247_v56, %v1246_v53  ;;  %v1281_v60 = vrot.slane %v1280_v57, 2  ;;  %v1807_v53 = vpop.f32.mrb[1].mxu1 }
 0x225   : > { %v1298_v61 = vadd.f32 %v1297_v58, %v1296_v55  ;;  %v1216_v55 = vpop.f32.mrb[2].mxu1 }
 0x226   : > { %v1249_v62 = vrot.slane %v1248_v59, 1  ;;  %v1282_v63 = vadd.f32 %v1281_v60, %v1280_v57  ;;  %v1808_v56 = vpop.f32.mrb[3].mxu1  ;;  %v993_v57 = vrot.slane %v2409_v12, %v992_v54 }
 0x227   : > { %v1299_v0 = vrot.slane %v1298_v61, 1  ;;  %v1220_v58 = vpop.f32.mrb[4].mxu1 }
 0x228   : > { %v1250_v1 = vadd.f32 %v1249_v62, %v1248_v59  ;;  %v1283_v2 = vrot.slane %v1282_v63, 1  ;;  %v1221_v59 = vadd.f32 %v1220_v58, %v993_v57  ;;  %v1811_v60 = vpop.f32.mrb[5].mxu1 }
 0x229   : > { %v1300_v3 = vadd.f32 %v1299_v0, %v1298_v61  ;;  %v1223_v61 = vpop.f32.mrb[6].mxu1 }
 0x22a   : > { %v1251_v4 = vmul.f32 0.125, %v1250_v1  ;;  %v1284_v5 = vadd.f32 %v1283_v2, %v1282_v63  ;;  %1232 = vst [vmem:[#allocation6] sm:$0xff] %v1221_v59  ;;  %v1812_v62 = vpop.f32.mrb[7].mxu1 }
 0x22b   : > { %v1302_v6 = vmul.f32 0.0625, %v1300_v3  ;;  %v1227_v63 = vpop.f32.mrb[8].mxu1  ;;  %v1355_v3 = vld [vmem:[%s2510_s10] sm:$0x3] }
 0x22c   : > { %v1252_v7 = vadd.f32 1e-05, %v1251_v4  ;;  %v1285_v8 = vmul.f32 0.125, %v1284_v5  ;;  %v1815_v0 = vpop.f32.mrb[9].mxu1  ;;  %v1360_v4 = vrot.slane %v1355_v3, %v984_v11 }
 0x22d   : > { %v1303_v9 = vsub.f32 %v1171_v43, %v1302_v6  ;;  %v1304_v13 = vsub.f32 %v1176_v44, %v1302_v6  ;;  %v1698_v44 = vld [vmem:[%s2506_s6] ss:$0 sm:$0xff]  ;;  %v1229_v1 = vpop.f32.mrb[10].mxu1 }
 0x22e   : > { %1979 = vrsqrt.f32 %v1252_v7  ;;  %v1286_v14 = vadd.f32 1e-05, %v1285_v8  ;;  %v1816_v2 = vpop.f32.mrb[11].mxu1 }
 0x22f   : > { %v1305_v15 = vmul.f32 %v1303_v9, %v1303_v9  ;;  %v1306_v16 = vmul.f32 %v1304_v13, %v1304_v13 }
 0x230   : > { %1981 = vrsqrt.f32 %v1286_v14 }
 0x231   : > { %v1307_v17 = vadd.f32 %v1306_v16, %v1305_v15  ;;  %v1364_v15 = vrot.slane %v1355_v3, %v988_v30 }
 0x233   : > { %v1308_v18 = vrot.slane %v1307_v17, 4 }
 0x235   : > { %v1309_v19 = vadd.f32 %v1308_v18, %v1307_v17 }
 0x237   : > { %v1310_v20 = vrot.slane %v1309_v19, 2 }
 0x238   : > { %v1980_v21 = vpop.eup %1979 }
 0x239   : > { %v1254_v23 = vmul.f32 %v1980_v21, %v1243_v40  ;;  %v1311_v24 = vadd.f32 %v1310_v20, %v1309_v19 }
 0x23a   : > { %v1982_v25 = vpop.eup %1981 }
 0x23b   : > { %v1261_v27 = vmul.f32 %v1695_v22, %v1254_v23  ;;  %v1288_v28 = vmul.f32 %v1982_v25, %v1277_v47  ;;  %v1312_v29 = vrot.slane %v1311_v24, 1 }
 0x23d   : > { %v1268_v31 = vadd.f32 %v1696_v26, %v1261_v27  ;;  %v1289_v32 = vmul.f32 %v1695_v22, %v1288_v28  ;;  %v1313_v33 = vadd.f32 %v1312_v29, %v1311_v24 }
 0x23f   : > { %v1290_v34 = vadd.f32 %v1696_v26, %v1289_v32  ;;  %v1314_v35 = vmul.f32 0.0625, %v1313_v33  ;;  %v1269_v36 = vmax.f32 %v1268_v31, 0.0 }
 0x241   : > { %v1291_v37 = vmax.f32 %v1290_v34, 0.0  ;;  %v1315_v38 = vadd.f32 1e-05, %v1314_v35 }
 0x243   : > { %1983 = vrsqrt.f32 %v1315_v38  ;;  %v1337_v39 = vpack.c.bf16 %v1291_v37, %v1269_v36 }
 0x245   : > { %1480 = vmatmul.mubr.bf16.vlgmr.msra.gmra.mrb[12].mxu0 %v1337_v39 }
 0x24d   : > { %v1984_v40 = vpop.eup %1983 }
 0x24e   : > { %v1317_v42 = vmul.f32 %v1984_v40, %v1303_v9  ;;  %v1318_v43 = vmul.f32 %v1984_v40, %v1304_v13 }
 0x250   : > { %v1325_v45 = vmul.f32 %v1697_v41, %v1317_v42  ;;  %v1326_v46 = vmul.f32 %v1697_v41, %v1318_v43 }
 0x252   : > { %v1333_v47 = vadd.f32 %v1698_v44, %v1325_v45  ;;  %v1334_v48 = vadd.f32 %v1698_v44, %v1326_v46 }
 0x254   : > { %v1335_v49 = vmax.f32 %v1333_v47, 0.0  ;;  %v1336_v50 = vmax.f32 %v1334_v48, 0.0 }
 0x256   : > { %v1338_v51 = vpack.c.bf16 %v1336_v50, %v1335_v49 }
 0x258   : > { %1488 = vmatmul.mubr.bf16.vlgmr.msra.gmra.mrb[12].mxu1 %v1338_v51 }
 0x318   : > { %v1481_v5 = vpop.f32.mrb[12].mxu0 }
 0x319   : > { %v1482_v6 = vadd.f32 %v1481_v5, %v1360_v4  ;;  %v1483_v12 = vpop.f32.mrb[13].mxu0 }
 0x31a   : > { %v1484_v7 = vpop.f32.mrb[14].mxu0 }
 0x31b   : > { %v1485_v8 = vadd.f32 %v1484_v7, %v1360_v4  ;;  %v1486_v9 = vpop.f32.mrb[15].mxu0  ;;  %v1496_v13 = vmul.f32 %v1482_v6, %v1482_v6 }
 0x31d   : > { %1498 = vadd.xlane.f32.xlu0 %v1496_v13  ;;  %v1497_v14 = vmul.f32 %v1485_v8, %v1485_v8 }
 0x321   : > { %1500 = vadd.xlane.f32.xlu0 %v1497_v14 }
 0x32b   : > { %v1489_v16 = vpop.f32.mrb[12].mxu1 }
 0x32c   : > { %v1490_v17 = vpop.f32.mrb[13].mxu1 }
 0x32d   : > { %v1491_v18 = vadd.f32 %v1490_v17, %v1364_v15  ;;  %v1492_v19 = vpop.f32.mrb[14].mxu1 }
 0x32e   : > { %v1493_v20 = vpop.f32.mrb[15].mxu1 }
 0x32f   : > { %v1494_v21 = vadd.f32 %v1493_v20, %v1364_v15  ;;  %v1510_v11 = vmul.f32 %v1491_v18, %v1491_v18 }
 0x331   : > { %1512 = vadd.xlane.f32.xlu1 %v1510_v11  ;;  %v1511_v22 = vmul.f32 %v1494_v21, %v1494_v21 }
 0x335   : > { %1514 = vadd.xlane.f32.xlu1 %v1511_v22 }
 0x3aa   : > { %v1499_v23 = vpop.xlane.xlu0 %1498 }
 0x3ab   : > { %v1502_v24 = vmax.f32 %v1499_v23, 1e-24 }
 0x3ad   : > { %1985 = vrsqrt.f32 %v1502_v24 }
 0x3ae   : > { %v1501_v25 = vpop.xlane.xlu0 %1500 }
 0x3af   : > { %v1503_v26 = vmax.f32 %v1501_v25, 1e-24 }
 0x3b1   : > { %1987 = vrsqrt.f32 %v1503_v26 }
 0x3b7   : > { %v1986_v27 = vpop.eup %1985 }
 0x3b8   : > { %v1506_v28 = vmul.f32 %v1986_v27, %v1482_v6 }
 0x3ba   : > { %1508 = vst [vmem:[%s2512_s12] sm:$0xff] %v1506_v28 }
 0x3bb   : > { %v1988_v10 = vpop.eup %1987 }
 0x3bc   : > { %v1507_v30 = vmul.f32 %v1988_v10, %v1485_v8 }
 0x3be   : > { %1509 = vst [vmem:[%s2512_s12 + $0x8] sm:$0xff] %v1507_v30  ;;  %v1513_v29 = vpop.xlane.xlu1 %1512 }
 0x3bf   : > { %v1516_v31 = vmax.f32 %v1513_v29, 1e-24 }
 0x3c1   : > { %1989 = vrsqrt.f32 %v1516_v31 }
 0x3c2   : > { %v1515_v32 = vpop.xlane.xlu1 %1514 }
 0x3c3   : > { %v1517_v33 = vmax.f32 %v1515_v32, 1e-24 }
 0x3c5   : > { %1991 = vrsqrt.f32 %v1517_v33 }
 0x3cb   : > { %v1990_v34 = vpop.eup %1989 }
 0x3cc   : > { %v1520_v35 = vmul.f32 %v1990_v34, %v1491_v18 }
 0x3ce   : > { %1522 = vst [vmem:[#allocation4] sm:$0xff] %v1520_v35 }
 0x3cf   : > { %v1992_v36 = vpop.eup %1991 }
 0x3d0   : > { %v1521_v37 = vmul.f32 %v1992_v36, %v1494_v21 }
 0x3d2   : > { %1523 = vst [vmem:[#allocation4 + $0x8] sm:$0xff] %v1521_v37 }
 0x3d3 PF: > { %p1843_p11 = scmp.eq.s32.totalorder %s2176_s16, 1  ;;  %s2081_s19 = smov [#allocation4]  }
 0x3d4   : > { %s1533_s21 = sshll.u32 %s2081_s19, 4  ;;  %s1534_s21 = int_to_ptr.vmem [resolvable:$true] %s1533_s21 }
 0x3d5   : > { %s1993_s22 = scalar_lea.vmem %s1534_s21, 256  ;;  %p2000_p1 = scmp.lt.s32.totalorder %s1534_s21, %s1534_s21 }
 0x3d6   : > { %p1994_p12 = scmp.ne.s32.totalorder %s1534_s21, %s1993_s22  ;;  %p2001_p2 = scmp.lt.s32.totalorder %s1993_s22, %s1993_s22 }
 0x3d8   : > { %p1995_p13 = pnand %p1994_p12, %p1843_p11  ;;  %p2002_p3 = por %p2001_p2, %p2000_p1 }
 0x3da   : > { %p1996_p0 = pneg %p1995_p13 }
 0x3dc   : > { %p2003_p4 = pnand %p2002_p3, %p1996_p0 }
 0x3de   : > { %2006 = shalt.err (!%p2003_p4)
}
 0x3df   : > { %s2007_s25 = scalar_lea.hbm %s2513_s13, 256 }
 0x3e0   : > { %p2008_p5 = scmp.ne.s32.totalorder %s2513_s13, %s2007_s25  ;;  %p2013_p8 = scmp.lt.u32.totalorder %s2007_s25, %s2513_s13 }
 0x3e2   : > { %p2009_p6 = pnand %p2008_p5, %p1843_p11 }
 0x3e4   : > { %p2010_p7 = pneg %p2009_p6 }
 0x3e6   : > { %p2015_p9 = pnand %p2013_p8, %p2010_p7 }
 0x3e8   : > { %2018 = shalt.err (!%p2015_p9)
}
 0x3e9   : > { %s2082_s28 = smov 128   ;;  %s2083_s18 = smov 8  }
 0x3ea   : > { %1836 = dma.vmem_to_hbm [thread:$0]  (%p1843_p11), %s1534_s21, 256, %s2513_s13, [#allocation5], %s2082_s28, %s2082_s28, %s2083_s18  }
 0x3eb   : > { %s2084_s23 = smov [#allocation6]  }
 0x3ec   : > { %s1547_s24 = sshll.u32 %s2084_s23, 4  ;;  %s1548_s24 = int_to_ptr.vmem [resolvable:$true] %s1547_s24 }
 0x3ed   : > { %s2019_s29 = scalar_lea.vmem %s1548_s24, 128  ;;  %p2026_p0 = scmp.lt.s32.totalorder %s1548_s24, %s1548_s24 }
 0x3ee   : > { %p2020_p10 = scmp.ne.s32.totalorder %s1548_s24, %s2019_s29  ;;  %p2027_p1 = scmp.lt.s32.totalorder %s2019_s29, %s2019_s29 }
 0x3f0   : > { %p2021_p12 = pnand %p2020_p10, %p1843_p11  ;;  %p2028_p2 = por %p2027_p1, %p2026_p0 }
 0x3f2   : > { %p2022_p13 = pneg %p2021_p12 }
 0x3f4   : > { %p2029_p3 = pnand %p2028_p2, %p2022_p13 }
 0x3f6   : > { %2032 = shalt.err (!%p2029_p3)
}
 0x3f7   : > { %s2033_s26 = scalar_lea.hbm %s2514_s14, 128 }
 0x3f8   : > { %p2034_p4 = scmp.ne.s32.totalorder %s2514_s14, %s2033_s26  ;;  %p2039_p7 = scmp.lt.u32.totalorder %s2033_s26, %s2514_s14 }
 0x3fa   : > { %p2035_p5 = pnand %p2034_p4, %p1843_p11 }
 0x3fc   : > { %p2036_p6 = pneg %p2035_p5 }
 0x3fe   : > { %p2041_p8 = pnand %p2039_p7, %p2036_p6 }
 0x400   : > { %2044 = shalt.err (!%p2041_p8)
}
 0x401   : > { %1838 = dma.vmem_to_hbm [thread:$0]  (%p1843_p11), %s1548_s24, 128, %s2514_s14, [#allocation7]  }
 0x402   : > { %2058 = dma.done.wait (%p1843_p11), [#allocation5], 256  }
 0x403   : > { %2060 = vsyncadd (%p1843_p11), [#allocation5], 4294967040 }
 0x404   : > { %2062 = dma.done.wait (%p1843_p11), [#allocation7], 128  }
 0x405   : > { %2064 = vsyncadd (%p1843_p11), [#allocation7], 4294967168 }
 0x406 PF: > { %p24_p9 = scmp.ge.s32.totalorder %s2179_s17, 4   ;;  %s2515_s29 = smov %s2071_s30 }
 0x407   : > { %s2516_s30 = smov %s2188_s20  ;;  %s2517_s15 = smov %s2179_s17 }
 0x408   :  { %26 = sbr.rel (!%p24_p9) target bundleno = 3 (0x3), region = 150 }
 0x40f   :  { %1567 = vsyncpa [#allocation5], 1 }
 0x410   :  { %1569 = vsyncpa [#allocation5 + $0x1], 1 }
 0x411   :  { %1570 = vsyncpa [#allocation7], 1 }

</bundles_post_ra>
